<compile_context>
chip_gen: v5e
topology: v5e:2x2
jax: 0.10.0
libtpu: 0.0.40
codegen_flags: <defaults>
</compile_context>

<pallas_src>
import functools
import math

import jax
import jax.numpy as jnp
from jax import lax
from jax.experimental import pallas as pl
from jax.experimental.pallas import tpu as pltpu


def _round_up(a, b):
    return -(-a // b) * b


def _label_smoothing_kernel(x_ref, t_ref, col_ref, out_ref, acc_ref, *,
                            padding_idx, coef_tgt, smooth_val, ent_const,
                            vocab, n_rows, tm, tiles_per_shard):
    c = pl.program_id(0)
    i = pl.program_id(1)

    @pl.when(i == 0)
    def _():
        acc_ref[...] = jnp.zeros_like(acc_ref)

    x = x_ref[...]                                   # (TM, V) native dtype
    tgt = t_ref[...]                                 # (TM, 1) int32
    col = col_ref[...]                               # (1, V) int32, resident

    # Nominal (unclamped) global row ids for this tile -> ragged-tail / padding mask.
    row0 = (c * tiles_per_shard + i) * tm
    row_ids = row0 + lax.broadcasted_iota(jnp.int32, (tm, 1), 0)
    ignore = (tgt == padding_idx) | (row_ids >= n_rows)
    tgt_m = jnp.where(ignore, 0, tgt)                # masked_fill(ignore, 0)

    # Row-wise log-softmax statistics. Keep the (TM, V) elementwise work in the
    # input dtype (bf16 VALU/EUP on v6e/v7x); accumulate lane reductions in f32.
    m = jnp.max(x, axis=-1, keepdims=True)
    z = x - m                                        # <= 0, exp never overflows
    ez = jnp.exp(z)
    sel = jnp.where(col == tgt_m, z, jnp.zeros_like(z))

    sum_exp = jnp.sum(ez.astype(jnp.float32), axis=-1, keepdims=True)
    sum_z = jnp.sum(z.astype(jnp.float32), axis=-1, keepdims=True)
    z_tgt = jnp.sum(sel.astype(jnp.float32), axis=-1, keepdims=True)
    lse = jnp.log(sum_exp)

    # Analytic label-smoothing KL per row:
    #   KL_row = ent_const - (conf - sv) * log_sm[tgt] - sv * sum_j log_sm_j
    log_sm_tgt = z_tgt - lse
    sum_log_sm = sum_z - jnp.float32(vocab) * lse
    kl_row = (jnp.float32(ent_const)
              - jnp.float32(coef_tgt) * log_sm_tgt
              - jnp.float32(smooth_val) * sum_log_sm)
    kl_row = jnp.where(ignore, 0.0, kl_row)          # padding rows + ragged tail
    acc_ref[...] += kl_row

    @pl.when(i == pl.num_programs(1) - 1)
    def _():
        total = jnp.sum(acc_ref[...], axis=0, keepdims=True)       # (1, 1)
        out_ref[...] = jnp.broadcast_to(total, out_ref.shape)      # lane-dense tile


def _vmem_budget_and_limit():
    try:
        cap = int(pltpu.get_tpu_info().vmem_capacity_bytes)
    except Exception:
        cap = 64 * 1024 * 1024                       # conservative (v7x-class)
    if cap >= 96 * 1024 * 1024:                      # v5e / v6e: 128 MiB physical
        return 90 * 1024 * 1024, 110 * 1024 * 1024
    return 30 * 1024 * 1024, 52 * 1024 * 1024        # v7x-class: 64 MiB physical


def _num_row_shards():
    # Leading "parallel" grid axis only helps on chips exposing 2 TensorCores
    # to a single Pallas device (megacore-style); otherwise keep it at 1.
    try:
        kind = jax.devices()[0].device_kind.lower()
    except Exception:
        return 1
    if any(tag in kind for tag in ("v4", "v5p", "v7", "7x")):
        return 2
    return 1


def _choose_tm(n_rows, vocab, itemsize, vmem_budget):
    # Live VMEM per row of a tile: double-buffered input (2 * itemsize) plus the
    # coexisting per-tile temporaries (z, exp(z), select result, one f32 copy of
    # the reduction input) ~ (itemsize + 12) bytes per element.
    per_row = vocab * (3 * itemsize + 12)
    tm = vmem_budget // max(per_row, 1)
    tm = max(16, min(1024, (tm // 16) * 16))         # 16-aligned (bf16-safe sublanes)
    tm = min(tm, _round_up(n_rows, 16))              # don't over-tile tiny inputs
    return int(tm)


def label_smoothing_loss(x, target, *, size, padding_idx, smoothing,
                         normalize_length=False, num_shards=None):
    """x: (B, T, size) float; target: (B, T) int. Returns scalar f32 loss."""
    B, T, V = x.shape
    assert V == size
    N = B * T
    itemsize = jnp.dtype(x.dtype).itemsize

    if num_shards is None:
        num_shards = _num_row_shards()

    budget, vmem_limit = _vmem_budget_and_limit()
    tm = _choose_tm(N, V, itemsize, budget)
    nb = -(-N // tm)                                  # number of real row blocks
    num_shards = max(1, min(num_shards, nb))
    tiles_per_shard = -(-nb // num_shards)

    x2 = x.reshape(N, V)
    t2 = target.reshape(N, 1).astype(jnp.int32)
    col_ids = lax.broadcasted_iota(jnp.int32, (1, V), 1)   # resident lane indices

    confidence = 1.0 - smoothing
    smooth_val = smoothing / (size - 1)
    # Entropy term of the smoothed target distribution (xlogy semantics), folded
    # at trace time.
    ent_const = 0.0
    if confidence > 0.0:
        ent_const += confidence * math.log(confidence)
    if smooth_val > 0.0:
        ent_const += (size - 1) * smooth_val * math.log(smooth_val)

    def row_block(c, i):
        # Clamp so that trailing fully-out-of-range tiles re-read the last valid
        # block (revisit -> DMA skipped); their rows are masked in-kernel via the
        # *unclamped* nominal row index.
        return jnp.minimum(c * tiles_per_shard + i, nb - 1)

    kernel = functools.partial(
        _label_smoothing_kernel,
        padding_idx=padding_idx,
        coef_tgt=confidence - smooth_val,
        smooth_val=smooth_val,
        ent_const=ent_const,
        vocab=V,
        n_rows=N,
        tm=tm,
        tiles_per_shard=tiles_per_shard,
    )

    cost = pl.CostEstimate(
        flops=6 * N * V,
        transcendentals=N * V,                        # one exp per element
        bytes_accessed=N * V * itemsize + N * 4 + V * 4 + num_shards * 8 * 128 * 4,
    )

    partials = pl.pallas_call(
        kernel,
        out_shape=jax.ShapeDtypeStruct((num_shards * 8, 128), jnp.float32),
        grid_spec=pltpu.PrefetchScalarGridSpec(
            num_scalar_prefetch=0,
            grid=(num_shards, tiles_per_shard),
            in_specs=[
                pl.BlockSpec((tm, V), lambda c, i: (row_block(c, i), 0)),
                pl.BlockSpec((tm, 1), lambda c, i: (row_block(c, i), 0)),
                pl.BlockSpec((1, V), lambda c, i: (0, 0)),
            ],
            out_specs=pl.BlockSpec((8, 128), lambda c, i: (c, 0)),
            scratch_shapes=[pltpu.VMEM((tm, 1), jnp.float32)],
        ),
        compiler_params=pltpu.CompilerParams(
            dimension_semantics=("parallel", "arbitrary"),
            vmem_limit_bytes=vmem_limit),
        cost_estimate=cost,
    )(x2, t2, col_ids)

    # One scalar per shard (the whole (8,128) tile holds the broadcast value).
    kl_sum = jnp.sum(partials[::8, 0])

    if normalize_length:
        denom = jnp.sum(target != padding_idx).astype(jnp.float32)
    else:
        denom = jnp.float32(B)
    return kl_sum / denom


if __name__ == "__main__":
    # Small config consistent with the module: (batch, seqlen, class)
    B, T, V = 2, 8, 32
    padding_idx = -1
    smoothing = 0.1

    key = jax.random.PRNGKey(0)
    kx, kt, km = jax.random.split(key, 3)
    x = jax.random.normal(kx, (B, T, V), dtype=jnp.float32)
    target = jax.random.randint(kt, (B, T), 0, V, dtype=jnp.int32)
    # mark some positions as padding (keep at least one real token)
    pad_mask = jax.random.bernoulli(km, 0.25, (B, T))
    target = jnp.where(pad_mask, padding_idx, target)
    target = target.at[0, 0].set(3)

    loss = label_smoothing_loss(
        x, target, size=V, padding_idx=padding_idx, smoothing=smoothing,
        normalize_length=False)
    jax.block_until_ready(loss)

    # Pure-JAX reference (same math as the PyTorch module, no Pallas).
    def ref_loss(x, target):
        xf = x.reshape(-1, V)
        tf = target.reshape(-1)
        ignore = tf == padding_idx
        tm_ = jnp.where(ignore, 0, tf)
        td = jnp.full((xf.shape[0], V), smoothing / (V - 1), jnp.float32)
        td = td.at[jnp.arange(xf.shape[0]), tm_].set(1.0 - smoothing)
        lsm = jax.nn.log_softmax(xf, axis=1)
        kl = jnp.where(td > 0, td * jnp.log(td), 0.0) - td * lsm
        kl = jnp.where(ignore[:, None], 0.0, kl)
        return jnp.sum(kl) / B

    ref = ref_loss(x, target)
    assert jnp.allclose(loss, ref, rtol=1e-4, atol=1e-4), (loss, ref)

    # Also exercise normalize_length=True path.
    loss_nl = label_smoothing_loss(
        x, target, size=V, padding_idx=padding_idx, smoothing=smoothing,
        normalize_length=True)
    jax.block_until_ready(loss_nl)
    ref_nl = ref_loss(x, target) * B / jnp.sum(target != padding_idx)
    assert jnp.allclose(loss_nl, ref_nl, rtol=1e-4, atol=1e-4), (loss_nl, ref_nl)

    print("KERNEL_OK")
</pallas_src>

<mosaic_0001>
module attributes {stable_mosaic.version = 11 : i64} {
  func.func @_label_smoothing_kernel(%arg0: i32, %arg1: i32, %arg2: memref<16x32xf32, #tpu.memory_space<vmem>>, %arg3: memref<16x1xi32, #tpu.memory_space<vmem>>, %arg4: memref<1x32xi32, #tpu.memory_space<vmem>>, %arg5: memref<8x128xf32, #tpu.memory_space<vmem>>, %arg6: memref<16x1xf32, #tpu.memory_space<vmem>>) attributes {dimension_semantics = [#tpu.dimension_semantics<parallel>, #tpu.dimension_semantics<arbitrary>], iteration_bounds = array<i64: 1, 1>, scalar_prefetch = 0 : i64, scratch_operands = 1 : i64, tpu.core_type = #tpu.core_type<tc>, window_params = [{transform_indices = @transform_0, window_bounds = array<i64: 16, 32>}, {transform_indices = @transform_1, window_bounds = array<i64: 16, 1>}, {pipeline_mode = #tpu.pipeline_mode<synchronous>, transform_indices = @transform_2, window_bounds = array<i64: 1, 32>}, {transform_indices = @transform_3, window_bounds = array<i64: 8, 128>}]} {
    %c0_i32 = arith.constant 0 : i32
    %0 = arith.cmpi eq, %arg1, %c0_i32 : i32
    %1 = arith.extui %0 : i1 to i32
    %c0_i32_0 = arith.constant 0 : i32
    %2 = arith.cmpi ne, %1, %c0_i32_0 : i32
    scf.if %2 {
      %cst_23 = arith.constant 0.000000e+00 : f32
      %55 = vector.broadcast %cst_23 : f32 to vector<16x1xf32>
      %c0_24 = arith.constant 0 : index
      %c0_25 = arith.constant 0 : index
      %56 = vector.load %arg6[%c0_24, %c0_25] : memref<16x1xf32, #tpu.memory_space<vmem>>, vector<16x1xf32>
      tpu.vector_store %arg6[%c0_24, %c0_25], %55 {strides = array<i32>} : memref<16x1xf32, #tpu.memory_space<vmem>>, vector<16x1xf32>,
    } else {
    }
    %c0 = arith.constant 0 : index
    %c0_1 = arith.constant 0 : index
    %3 = vector.load %arg2[%c0, %c0_1] : memref<16x32xf32, #tpu.memory_space<vmem>>, vector<16x32xf32>
    %c0_2 = arith.constant 0 : index
    %c0_3 = arith.constant 0 : index
    %4 = vector.load %arg3[%c0_2, %c0_3] : memref<16x1xi32, #tpu.memory_space<vmem>>, vector<16x1xi32>
    %c0_4 = arith.constant 0 : index
    %c0_5 = arith.constant 0 : index
    %5 = vector.load %arg4[%c0_4, %c0_5] : memref<1x32xi32, #tpu.memory_space<vmem>>, vector<1x32xi32>
    %c1_i32 = arith.constant 1 : i32
    %6 = arith.muli %arg0, %c1_i32 : i32
    %7 = arith.addi %6, %arg1 : i32
    %c16_i32 = arith.constant 16 : i32
    %8 = arith.muli %7, %c16_i32 : i32
    %9 = tpu.iota {dimensions = array<i32: 0>} : vector<16x1xi32>
    %10 = vector.broadcast %8 : i32 to vector<16x1xi32>
    %11 = arith.addi %10, %9 : vector<16x1xi32>
    %c-1_i32 = arith.constant -1 : i32
    %12 = vector.broadcast %c-1_i32 : i32 to vector<16x1xi32>
    %13 = arith.cmpi eq, %4, %12 : vector<16x1xi32>
    %c16_i32_6 = arith.constant 16 : i32
    %14 = vector.broadcast %c16_i32_6 : i32 to vector<16x1xi32>
    %15 = arith.cmpi sge, %11, %14 : vector<16x1xi32>
    %16 = arith.ori %13, %15 : vector<16x1xi1>
    %c0_i32_7 = arith.constant 0 : i32
    %17 = vector.broadcast %c0_i32_7 : i32 to vector<16x1xi32>
    %18 = arith.select %16, %17, %4 : vector<16x1xi1>, vector<16x1xi32>
    %cst = arith.constant dense<0xFF800000> : vector<16xf32>
    %19 = vector.multi_reduction <maximumf>, %3, %cst [1] : vector<16x32xf32> to vector<16xf32>
    %20 = vector.shape_cast %19 : vector<16xf32> to vector<16x1xf32>
    %21 = vector.broadcast %20 : vector<16x1xf32> to vector<16x32xf32>
    %22 = arith.subf %3, %21 : vector<16x32xf32>
    %23 = math.exp %22 : vector<16x32xf32>
    %24 = vector.broadcast %5 : vector<1x32xi32> to vector<16x32xi32>
    %25 = vector.broadcast %18 : vector<16x1xi32> to vector<16x32xi32>
    %26 = arith.cmpi eq, %24, %25 : vector<16x32xi32>
    %cst_8 = arith.constant 0.000000e+00 : f32
    %27 = vector.broadcast %cst_8 : f32 to vector<16x32xf32>
    %28 = arith.select %26, %22, %27 : vector<16x32xi1>, vector<16x32xf32>
    %cst_9 = arith.constant dense<0.000000e+00> : vector<16xf32>
    %29 = vector.multi_reduction <add>, %23, %cst_9 [1] : vector<16x32xf32> to vector<16xf32>
    %30 = vector.shape_cast %29 : vector<16xf32> to vector<16x1xf32>
    %cst_10 = arith.constant dense<0.000000e+00> : vector<16xf32>
    %31 = vector.multi_reduction <add>, %22, %cst_10 [1] : vector<16x32xf32> to vector<16xf32>
    %32 = vector.shape_cast %31 : vector<16xf32> to vector<16x1xf32>
    %cst_11 = arith.constant dense<0.000000e+00> : vector<16xf32>
    %33 = vector.multi_reduction <add>, %28, %cst_11 [1] : vector<16x32xf32> to vector<16xf32>
    %34 = vector.shape_cast %33 : vector<16xf32> to vector<16x1xf32>
    %35 = math.log %30 : vector<16x1xf32>
    %36 = arith.subf %34, %35 : vector<16x1xf32>
    %cst_12 = arith.constant 3.200000e+01 : f32
    %37 = vector.broadcast %cst_12 : f32 to vector<16x1xf32>
    %38 = arith.mulf %37, %35 : vector<16x1xf32>
    %39 = arith.subf %32, %38 : vector<16x1xf32>
    %cst_13 = arith.constant 0.896774172 : f32
    %40 = vector.broadcast %cst_13 : f32 to vector<16x1xf32>
    %41 = arith.mulf %40, %36 : vector<16x1xf32>
    %cst_14 = arith.constant -0.668481708 : f32
    %42 = vector.broadcast %cst_14 : f32 to vector<16x1xf32>
    %43 = arith.subf %42, %41 : vector<16x1xf32>
    %cst_15 = arith.constant 0.0032258064 : f32
    %44 = vector.broadcast %cst_15 : f32 to vector<16x1xf32>
    %45 = arith.mulf %44, %39 : vector<16x1xf32>
    %46 = arith.subf %43, %45 : vector<16x1xf32>
    %cst_16 = arith.constant 0.000000e+00 : f32
    %47 = vector.broadcast %cst_16 : f32 to vector<16x1xf32>
    %48 = arith.select %16, %47, %46 : vector<16x1xi1>, vector<16x1xf32>
    %c0_17 = arith.constant 0 : index
    %c0_18 = arith.constant 0 : index
    %49 = vector.load %arg6[%c0_17, %c0_18] : memref<16x1xf32, #tpu.memory_space<vmem>>, vector<16x1xf32>
    %50 = arith.addf %49, %48 : vector<16x1xf32>
    %c0_19 = arith.constant 0 : index
    %c0_20 = arith.constant 0 : index
    %51 = vector.load %arg6[%c0_19, %c0_20] : memref<16x1xf32, #tpu.memory_space<vmem>>, vector<16x1xf32>
    tpu.vector_store %arg6[%c0_19, %c0_20], %50 {strides = array<i32>} : memref<16x1xf32, #tpu.memory_space<vmem>>, vector<16x1xf32>,
    %c0_i32_21 = arith.constant 0 : i32
    %52 = arith.cmpi eq, %arg1, %c0_i32_21 : i32
    %53 = arith.extui %52 : i1 to i32
    %c0_i32_22 = arith.constant 0 : i32
    %54 = arith.cmpi ne, %53, %c0_i32_22 : i32
    scf.if %54 {
      %c0_23 = arith.constant 0 : index
      %c0_24 = arith.constant 0 : index
      %55 = vector.load %arg6[%c0_23, %c0_24] : memref<16x1xf32, #tpu.memory_space<vmem>>, vector<16x1xf32>
      %cst_25 = arith.constant dense<0.000000e+00> : vector<1xf32>
      %56 = vector.multi_reduction <add>, %55, %cst_25 [0] : vector<16x1xf32> to vector<1xf32>
      %57 = vector.shape_cast %56 : vector<1xf32> to vector<1x1xf32>
      %58 = vector.shape_cast %57 : vector<1x1xf32> to vector<1x1xf32>
      %59 = vector.broadcast %58 : vector<1x1xf32> to vector<8x128xf32>
      %c0_26 = arith.constant 0 : index
      %c0_27 = arith.constant 0 : index
      %60 = vector.load %arg5[%c0_26, %c0_27] : memref<8x128xf32, #tpu.memory_space<vmem>>, vector<8x128xf32>
      tpu.vector_store %arg5[%c0_26, %c0_27], %59 {strides = array<i32>} : memref<8x128xf32, #tpu.memory_space<vmem>>, vector<8x128xf32>,
    } else {
    }
    return
  }
  func.func @transform_0(%arg0: i32, %arg1: i32) -> (i32, i32) {
    %c1_i32 = arith.constant 1 : i32
    %0 = arith.muli %arg0, %c1_i32 : i32
    %1 = arith.addi %0, %arg1 : i32
    %c0_i32 = arith.constant 0 : i32
    %2 = arith.minsi %1, %c0_i32 : i32
    %c0_i32_0 = arith.constant 0 : i32
    %c0_i32_1 = arith.constant 0 : i32
    return %2, %c0_i32_0 : i32, i32
  }
  func.func @transform_1(%arg0: i32, %arg1: i32) -> (i32, i32) {
    %c1_i32 = arith.constant 1 : i32
    %0 = arith.muli %arg0, %c1_i32 : i32
    %1 = arith.addi %0, %arg1 : i32
    %c0_i32 = arith.constant 0 : i32
    %2 = arith.minsi %1, %c0_i32 : i32
    %c0_i32_0 = arith.constant 0 : i32
    %c0_i32_1 = arith.constant 0 : i32
    return %2, %c0_i32_0 : i32, i32
  }
  func.func @transform_2(%arg0: i32, %arg1: i32) -> (i32, i32) {
    %c0_i32 = arith.constant 0 : i32
    %c0_i32_0 = arith.constant 0 : i32
    %c0_i32_1 = arith.constant 0 : i32
    return %c0_i32, %c0_i32_0 : i32, i32
  }
  func.func @transform_3(%arg0: i32, %arg1: i32) -> (i32, i32) {
    %c0_i32 = arith.constant 0 : i32
    %c0_i32_0 = arith.constant 0 : i32
    return %arg0, %c0_i32 : i32, i32
  }
}

</mosaic_0001>

<bundles_post_ra>
// kernel: tpu_custom_call.1
= control target key start
LH: loop header
LB: loop body
LE: loop exit
PB: predicated region body
PF: predicated region fallthrough
CT: control target
= control target key end

     0   :  { %vm107_vm0 = vcmask 261120   ;;  %v265_v3 = vmov 0   ;;  %s336_s0 = inlined_call_operand.vmem [shape: f32[16,32], index: 0, kind: input, shape index: {}]   ;;  %s337_s1 = inlined_call_operand.vmem [shape: s32[16,1], index: 1, kind: input, shape index: {}]   ;;  %s338_s2 = inlined_call_operand.vmem [shape: s32[1,32], index: 2, kind: input, shape index: {}]   ;;  %s339_s3 = inlined_call_operand.hbm [shape: f32[8,128], index: 3, kind: output, shape index: {}]  }
   0x1   :  { %v86_v0 = vld [vmem:[%s336_s0] sm:$0xff]  ;;  %227 = vset.pattern.permute.xlu1 %v265_v3  ;;  %228 = vset.pattern.permute.xlu2 %v265_v3  ;;  %v304_v5 = vld [vmem:[%s337_s1 + $0x8] sm:$0xff] }
   0x2   :  { %v294_v1 = vld [vmem:[%s337_s1] sm:$0xff]  ;;  %v108_v2 = vsel %vm107_vm0, %v86_v0, -inf }
   0x3   :  { %vm99_vm1 = vcmp.eq.s32.totalorder %v294_v1, 4294967295  ;;  %109 = vmax.xlane.f32.xlu0 %v108_v2 }
   0x4   :  { %v105_v4 = vsel %vm99_vm1, 0, %v294_v1 }
   0x5   :  { %8 = vsyncpa [#allocation4], 0  ;;  %122 = vperm.xlu1 %227, %v105_v4   ;;  %229 = vset.pattern.permute.xlu0 %v265_v3  ;;  %v87_v6 = vld [vmem:[%s336_s0 + $0x8] sm:$0xff]  ;;  %vm100_vm2 = vcmp.eq.s32.totalorder %v304_v5, 4294967295  ;;  %v230_v9 = vld [vmem:[%s338_s2] ss:$0 sm:$0xff] }
   0x6   :  { %v111_v7 = vsel %vm107_vm0, %v87_v6, -inf  ;;  %v106_v8 = vsel %vm100_vm2, 0, %v304_v5  ;;  %vm83_vm5 = vcmask 7168   ;;  %v266_v28 = vmov 0.0   ;;  %s267_s0 = smov [#allocation3]   ;;  %s203_s23 = sshll.u32 %s339_s3, 4  ;;  %s204_s23 = int_to_ptr.hbm [resolvable:$true] %s203_s23 }
   0x7   :  { %85 = vst.msk [vmem:[#allocation2 + $0x8] sm:$0xff] %vm83_vm5, %v266_v28  ;;  %s201_s2 = sshll.u32 %s267_s0, 4  ;;  %s202_s2 = int_to_ptr.vmem [resolvable:$true] %s201_s2 }
   0x8   :  { %84 = vst.msk [vmem:[#allocation2] sm:$0xff] %vm83_vm5, %v266_v28 }
   0xb   :  { %112 = vmax.xlane.f32.xlu0 %v111_v7 }
   0xd   :  { %125 = vperm.xlu1 %227, %v106_v8  }
   0xe   :  { %v170_v55 = vld [vmem:[#allocation2 + $0x8] sm:$0xff] }
   0xf   :  { %v169_v50 = vld [vmem:[#allocation2] sm:$0xff] }
  0x76   :  { %v110_v10 = vpop.xlane.xlu0 %109 }
  0x77   :  { %v123_v11 = vpop.permute.xlu1 %122  ;;  %v114_v12 = vsub.f32 %v86_v0, %v110_v10 }
  0x78   :  { %vm127_vm3 = vcmp.eq.s32.totalorder %v230_v9, %v123_v11 }
  0x79   :  { %v116_v13 = vmul.f32 1.442695, %v114_v12  ;;  %v129_v14 = vsel %vm127_vm3, %v114_v12, 0.0  ;;  %v137_v27 = vsel %vm107_vm0, %v114_v12, 0.0 }
  0x7a   :  { %v143_v15 = vsel %vm107_vm0, %v129_v14, 0.0 }
  0x7b   :  { %231 = vpow2.f32 %v116_v13  ;;  %144 = vadd.xlane.f32.xlu0 %v143_v15 }
  0x7e   :  { %v113_v16 = vpop.xlane.xlu0 %112 }
  0x7f   :  { %v126_v17 = vpop.permute.xlu1 %125  ;;  %v115_v18 = vsub.f32 %v87_v6, %v113_v16 }
  0x80   :  { %vm128_vm4 = vcmp.eq.s32.totalorder %v230_v9, %v126_v17 }
  0x81   :  { %v232_v19 = vpop.eup %231  ;;  %v118_v20 = vmul.f32 1.442695, %v115_v18  ;;  %v140_v21 = vsel %vm107_vm0, %v115_v18, 0.0  ;;  %v130_v22 = vsel %vm128_vm4, %v115_v18, 0.0 }
  0x82   :  { %v131_v23 = vsel %vm107_vm0, %v232_v19, 0.0  ;;  %v146_v24 = vsel %vm107_vm0, %v130_v22, 0.0 }
  0x83   :  { %233 = vpow2.f32 %v118_v20  ;;  %132 = vadd.xlane.f32.xlu2 %v131_v23  ;;  %141 = vadd.xlane.f32.xlu0 %v140_v21 }
  0x84   :  { %147 = vadd.xlane.f32.xlu1 %v146_v24 }
  0x89   :  { %v234_v25 = vpop.eup %233 }
  0x8a   :  { %v134_v26 = vsel %vm107_vm0, %v234_v25, 0.0 }
  0x8b   :  { %135 = vadd.xlane.f32.xlu2 %v134_v26 }
  0x93   :  { %138 = vadd.xlane.f32.xlu2 %v137_v27 }
  0xee   :  { %v145_v33 = vpop.xlane.xlu0 %144 }
  0xf6   :  { %v133_v29 = vpop.xlane.xlu2 %132  ;;  %v142_v44 = vpop.xlane.xlu0 %141 }
  0xf7   :  { %235 = vlog2.f32 %v133_v29  ;;  %v148_v40 = vpop.xlane.xlu1 %147 }
  0xfd   :  { %v236_v30 = vpop.eup %235 }
  0xfe   :  { %v150_v31 = vmul.f32 0.6931472, %v236_v30  ;;  %v136_v32 = vpop.xlane.xlu2 %135 }
  0xff   :  { %237 = vlog2.f32 %v136_v32 }
 0x100   :  { %v153_v34 = vsub.f32 %v145_v33, %v150_v31  ;;  %v155_v37 = vmul.f32 32.0, %v150_v31 }
 0x102   :  { %v159_v36 = vmul.f32 0.8967742, %v153_v34 }
 0x104   :  { %v161_v45 = vsub.f32 -0.6684817, %v159_v36 }
 0x105   :  { %v238_v35 = vpop.eup %237 }
 0x106   :  { %v152_v38 = vmul.f32 0.6931472, %v238_v35  ;;  %v139_v39 = vpop.xlane.xlu2 %138 }
 0x107   :  { %v157_v41 = vsub.f32 %v139_v39, %v155_v37 }
 0x108   :  { %v154_v42 = vsub.f32 %v148_v40, %v152_v38  ;;  %v156_v43 = vmul.f32 32.0, %v152_v38 }
 0x109   :  { %v163_v46 = vmul.f32 0.0032258064, %v157_v41 }
 0x10a   :  { %v158_v47 = vsub.f32 %v142_v44, %v156_v43  ;;  %v160_v48 = vmul.f32 0.8967742, %v154_v42 }
 0x10b   :  { %v165_v49 = vsub.f32 %v161_v45, %v163_v46 }
 0x10c   :  { %v162_v51 = vsub.f32 -0.6684817, %v160_v48  ;;  %v164_v52 = vmul.f32 0.0032258064, %v158_v47 }
 0x10d   :  { %v167_v53 = vsel %vm99_vm1, 0.0, %v165_v49 }
 0x10e   :  { %v166_v54 = vsub.f32 %v162_v51, %v164_v52  ;;  %v171_v56 = vadd.f32 %v169_v50, %v167_v53 }
 0x110   :  { %v168_v57 = vsel %vm100_vm2, 0.0, %v166_v54  ;;  %174 = vst.msk [vmem:[#allocation2] sm:$0xff] %vm83_vm5, %v171_v56 }
 0x111   :  { %v172_v58 = vadd.f32 %v170_v55, %v168_v57 }
 0x113   :  { %175 = vst.msk [vmem:[#allocation2 + $0x8] sm:$0xff] %vm83_vm5, %v172_v58 }
 0x117   :  { %v179_v59 = vld [vmem:[#allocation2] sm:$0xff] }
 0x118   :  { %v181_v61 = vsel %vm83_vm5, %v179_v59, 0.0 }
 0x11a   :  { %v180_v60 = vld [vmem:[#allocation2 + $0x8] sm:$0xff] }
 0x11b   :  { %v182_v62 = vsel %vm83_vm5, %v180_v60, 0.0 }
 0x11c   :  { %v183_v63 = vadd.f32 %v182_v62, %v181_v61 }
 0x11e   :  { %v184_v0 = vrot.slane %v183_v63, 4 }
 0x120   :  { %v185_v1 = vadd.f32 %v184_v0, %v183_v63 }
 0x122   :  { %v186_v2 = vrot.slane %v185_v1, 2 }
 0x124   :  { %v187_v3 = vadd.f32 %v186_v2, %v185_v1 }
 0x126   :  { %v188_v4 = vrot.slane %v187_v3, 1 }
 0x128   :  { %v189_v6 = vadd.f32 %v188_v4, %v187_v3 }
 0x12a   :  { %192 = vperm.xlu2 %228, %v189_v6  }
 0x184   :  { %v193_v5 = vpop.permute.xlu2 %192 }
 0x185   :  { %195 = vst [vmem:[#allocation3] sm:$0xff] %v193_v5 }
 0x186   :  { %206 = dma.vmem_to_hbm [thread:$0]  %s202_s2, 128, %s204_s23, [#allocation4]  }
 0x187   :  { %263 = dma.done.wait [#allocation4], 128  }
 0x188   :  { %264 = vsyncadd [#allocation4], 4294967168 }
 0x189   :  { %211 = vsyncpa [#allocation4], 1 }

</bundles_post_ra>
